<compile_context>
chip_gen: v5e
topology: v5e:2x2
jax: 0.10.0
libtpu: 0.0.40
codegen_flags: <defaults>
</compile_context>

<pallas_src>
import functools

import jax
import jax.numpy as jnp
from jax.experimental import pallas as pl
from jax.experimental.pallas import tpu as pltpu


_VMEM_LIMIT = 32 * 1024 * 1024       # blocks / fc12 (safe on all generations)
_FC3_VMEM_LIMIT = 44 * 1024 * 1024   # fc3: ~33 MiB used; v7x physical is 64 MiB
_VMEM_SPEC = pl.BlockSpec(memory_space=pltpu.MemorySpace.VMEM)


# --------------------------------------------------------------------------
# Probe pltpu.roll's rotation convention once (on the exact 4-D / axis=2
# pattern the conv kernels use).  Returns +1 if it matches jnp.roll
# (result[i] = x[i - shift]), else -1.
# --------------------------------------------------------------------------
def _probe_roll_sign():
    shape = (2, 3, 8, 128)

    def k(x_ref, o_ref):
        o_ref[...] = pltpu.roll(x_ref[...], shift=1, axis=2)

    x = jnp.arange(2 * 3 * 8 * 128, dtype=jnp.float32).reshape(shape)
    y = pl.pallas_call(
        k,
        out_shape=jax.ShapeDtypeStruct(shape, jnp.float32),
        in_specs=[_VMEM_SPEC],
        out_specs=_VMEM_SPEC,
    )(x)
    return 1 if bool(jnp.allclose(y[0, 0, 1], x[0, 0, 0])) else -1


# --------------------------------------------------------------------------
# Fused fc1+fc2 (+concat) kernel: one matmul against a block-diagonal bf16
# weight, LeakyReLU(0.2), bf16 output (feeds fc3's MXU directly).
# --------------------------------------------------------------------------
def _fc12_kernel(x_ref, w_ref, b_ref, o_ref, *, slope):
    y = jnp.dot(x_ref[...], w_ref[...],
                preferred_element_type=jnp.float32) + b_ref[...]
    o_ref[...] = jnp.where(y >= 0.0, y, slope * y).astype(o_ref.dtype)


def fc12_forward(xcat, w, b, *, slope=0.2, tn=8192):
    """xcat:(B,K) bf16, w:(K,N) bf16 block-diagonal, b:(N,) f32 -> (B,N) bf16."""
    B, K = xcat.shape
    Kw, N = w.shape
    assert K == Kw and N % tn == 0
    return pl.pallas_call(
        functools.partial(_fc12_kernel, slope=slope),
        out_shape=jax.ShapeDtypeStruct((B, N), jnp.bfloat16),
        grid_spec=pltpu.PrefetchScalarGridSpec(
            num_scalar_prefetch=0,
            grid=(N // tn,),
            in_specs=[
                pl.BlockSpec((B, K), lambda n: (0, 0)),
                pl.BlockSpec((K, tn), lambda n: (0, n)),
                pl.BlockSpec((1, tn), lambda n: (0, n)),
            ],
            out_specs=pl.BlockSpec((B, tn), lambda n: (0, n)),
        ),
        compiler_params=pltpu.CompilerParams(
            dimension_semantics=("parallel",),
            vmem_limit_bytes=_VMEM_LIMIT,
        ),
    )(xcat, w, b.reshape(1, N))


# --------------------------------------------------------------------------
# fc3 kernel: int8 weights (per-column scale), dequant-to-bf16 in-kernel,
# bf16 MXU with f32 accumulation, scale+bias+LeakyReLU epilogue.
# Grid (N/tn, K/tk) with N split "parallel" (v7x dual-TC streams both halves).
# --------------------------------------------------------------------------
def _fc3_kernel(x_ref, q_ref, s_ref, b_ref, o_ref, acc_ref, *, slope):
    k = pl.program_id(1)

    @pl.when(k == 0)
    def _init():
        acc_ref[...] = jnp.zeros_like(acc_ref)

    # int8 -> bf16 is exact (integers in [-127, 127]); scale applied at the end.
    acc_ref[...] += jnp.dot(x_ref[...], q_ref[...].astype(jnp.bfloat16),
                            preferred_element_type=jnp.float32)

    @pl.when(k == pl.num_programs(1) - 1)
    def _fin():
        y = acc_ref[...] * s_ref[...] + b_ref[...]
        o_ref[...] = jnp.where(y >= 0.0, y, slope * y).astype(o_ref.dtype)


def fc3_forward(x, q, s, b, *, slope=0.01, tn=4096, tk=2048):
    """x:(B,K) bf16, q:(K,N) int8, s:(N,) f32 per-col scale, b:(N,) f32."""
    B, K = x.shape
    Kq, N = q.shape
    assert K == Kq and N % tn == 0 and K % tk == 0
    return pl.pallas_call(
        functools.partial(_fc3_kernel, slope=slope),
        out_shape=jax.ShapeDtypeStruct((B, N), jnp.float32),
        grid_spec=pltpu.PrefetchScalarGridSpec(
            num_scalar_prefetch=0,
            grid=(N // tn, K // tk),
            in_specs=[
                pl.BlockSpec((B, tk), lambda n, k: (0, k)),
                pl.BlockSpec((tk, tn), lambda n, k: (k, n)),
                pl.BlockSpec((1, tn), lambda n, k: (0, n)),
                pl.BlockSpec((1, tn), lambda n, k: (0, n)),
            ],
            out_specs=pl.BlockSpec((B, tn), lambda n, k: (0, n)),
            scratch_shapes=[pltpu.VMEM((B, tn), jnp.float32)],
        ),
        compiler_params=pltpu.CompilerParams(
            dimension_semantics=("parallel", "arbitrary"),
            vmem_limit_bytes=_FC3_VMEM_LIMIT,
        ),
    )(x, q, s.reshape(1, N), b.reshape(1, N))


# --------------------------------------------------------------------------
# In-kernel 3x3 'same' conv from an H-padded VMEM scratch.
#   pad_ref : (N, H+2, W, Cin) f32 scratch, rows 0 and H+1 are zero.
#   w_ref   : (3, 3, Cin, Cout) f32 (HWIO, cross-correlation like torch).
# Returns (N*H*W, Cout) f32.
# W-shifts use pltpu.roll (XLU) + boundary mask; H-shifts are aligned slices.
# TODO(synk): fold the 3 dh taps into one matmul per dw (K = 3*Cin).
# --------------------------------------------------------------------------
def _conv3x3_from_padded(pad_ref, w_ref, roll_sign):
    full = pad_ref[...]
    N, Hp, W, Cin = full.shape
    H = Hp - 2
    Cout = w_ref.shape[-1]
    P = N * H * W
    col = jax.lax.broadcasted_iota(jnp.int32, full.shape, 2)
    acc = jnp.zeros((P, Cout), jnp.float32)
    for dw in (-1, 0, 1):
        if dw == 0:
            shifted = full
        else:
            rolled = pltpu.roll(full, shift=(-dw * roll_sign) % W, axis=2)
            if dw == -1:
                shifted = jnp.where(col >= 1, rolled, 0.0)
            else:
                shifted = jnp.where(col <= W - 2, rolled, 0.0)
        for dh in (-1, 0, 1):
            patch = shifted[:, dh + 1:dh + 1 + H, :, :]  # (N,H,W,Cin)
            acc = acc + jnp.dot(patch.reshape(P, Cin), w_ref[dh + 1, dw + 1],
                                preferred_element_type=jnp.float32)
    return acc


def _bn_lrelu(acc, g, be, *, eps=1e-5, slope=0.01):
    """Training-mode BatchNorm (two-pass, biased var) + LeakyReLU on (P, C)."""
    mean = jnp.mean(acc, axis=0, keepdims=True)
    xc = acc - mean
    var = jnp.mean(xc * xc, axis=0, keepdims=True)
    y = xc * jax.lax.rsqrt(var + eps) * g + be
    return jnp.where(y >= 0.0, y, slope * y)


# --------------------------------------------------------------------------
# Fused residual Block kernel: conv1+BN+LReLU -> conv2+BN+LReLU ->
# conv3+BN+LReLU -> +skip, all in one pallas_call with VMEM-resident
# intermediates and in-kernel zero padding (border rows only).
# --------------------------------------------------------------------------
def _make_block_kernel(N, H, W, C, roll_sign):
    Ch = C // 2

    def kernel(x_ref,
               w1_ref, b1_ref, g1_ref, be1_ref,
               w2_ref, b2_ref, g2_ref, be2_ref,
               w3_ref, b3_ref, g3_ref, be3_ref,
               o_ref, pc_ref, ph_ref):
        # Zero only the two H-border rows; the interior is overwritten below.
        pc_ref[:, 0:1] = jnp.zeros((N, 1, W, C), jnp.float32)
        pc_ref[:, H + 1:H + 2] = jnp.zeros((N, 1, W, C), jnp.float32)
        ph_ref[:, 0:1] = jnp.zeros((N, 1, W, Ch), jnp.float32)
        ph_ref[:, H + 1:H + 2] = jnp.zeros((N, 1, W, Ch), jnp.float32)

        x = x_ref[...]
        pc_ref[:, 1:H + 1] = x

        a1 = _conv3x3_from_padded(pc_ref, w1_ref, roll_sign) + b1_ref[...]
        h1 = _bn_lrelu(a1, g1_ref[...], be1_ref[...])            # (P, Ch)
        ph_ref[:, 1:H + 1] = h1.reshape(N, H, W, Ch)

        a2 = _conv3x3_from_padded(ph_ref, w2_ref, roll_sign) + b2_ref[...]
        h2 = _bn_lrelu(a2, g2_ref[...], be2_ref[...])            # (P, Ch)
        ph_ref[:, 1:H + 1] = h2.reshape(N, H, W, Ch)

        a3 = _conv3x3_from_padded(ph_ref, w3_ref, roll_sign) + b3_ref[...]
        h3 = _bn_lrelu(a3, g3_ref[...], be3_ref[...])            # (P, C)

        o_ref[...] = (x + h3.reshape(N, H, W, C)).astype(o_ref.dtype)

    return kernel


def block_forward(x, p, roll_sign):
    """x: (N, H, W, C) NHWC f32."""
    N, H, W, C = x.shape
    Ch = C // 2
    (w1, b1), (w2, b2), (w3, b3) = p["c1"], p["c2"], p["c3"]
    (g1, be1), (g2, be2), (g3, be3) = p["bn1"], p["bn2"], p["bn3"]
    kernel = _make_block_kernel(N, H, W, C, roll_sign)
    return pl.pallas_call(
        kernel,
        out_shape=jax.ShapeDtypeStruct((N, H, W, C), x.dtype),
        in_specs=[_VMEM_SPEC] * 13,
        out_specs=_VMEM_SPEC,
        scratch_shapes=[pltpu.VMEM((N, H + 2, W, C), jnp.float32),
                        pltpu.VMEM((N, H + 2, W, Ch), jnp.float32)],
        compiler_params=pltpu.CompilerParams(vmem_limit_bytes=_VMEM_LIMIT),
    )(x,
      w1, b1.reshape(1, Ch), g1.reshape(1, Ch), be1.reshape(1, Ch),
      w2, b2.reshape(1, Ch), g2.reshape(1, Ch), be2.reshape(1, Ch),
      w3, b3.reshape(1, C), g3.reshape(1, C), be3.reshape(1, C))


# --------------------------------------------------------------------------
# Fused final conv (128 -> 3, bias only) + tanh, two outputs (img, logits).
# --------------------------------------------------------------------------
def _make_final_kernel(N, H, W, C, Cout, roll_sign):
    def kernel(x_ref, w_ref, b_ref, img_ref, logit_ref, pc_ref):
        pc_ref[:, 0:1] = jnp.zeros((N, 1, W, C), jnp.float32)
        pc_ref[:, H + 1:H + 2] = jnp.zeros((N, 1, W, C), jnp.float32)
        pc_ref[:, 1:H + 1] = x_ref[...]
        acc = _conv3x3_from_padded(pc_ref, w_ref, roll_sign) + b_ref[...]
        logits = acc.reshape(N, H, W, Cout)
        logit_ref[...] = logits.astype(logit_ref.dtype)
        img_ref[...] = jnp.tanh(logits).astype(img_ref.dtype)

    return kernel


def final_conv_tanh(x, w, b, roll_sign):
    N, H, W, C = x.shape
    Cout = w.shape[-1]
    kernel = _make_final_kernel(N, H, W, C, Cout, roll_sign)
    img, logits = pl.pallas_call(
        kernel,
        out_shape=(jax.ShapeDtypeStruct((N, H, W, Cout), x.dtype),
                   jax.ShapeDtypeStruct((N, H, W, Cout), x.dtype)),
        in_specs=[_VMEM_SPEC] * 3,
        out_specs=(_VMEM_SPEC, _VMEM_SPEC),
        scratch_shapes=[pltpu.VMEM((N, H + 2, W, C), jnp.float32)],
        compiler_params=pltpu.CompilerParams(vmem_limit_bytes=_VMEM_LIMIT),
    )(x, w, b.reshape(1, Cout))
    return img, logits


# --------------------------------------------------------------------------
# Bilinear 2x upsample, align_corners=False (F.interpolate semantics).
# Tiny tensors -> plain-JAX glue shared by the Pallas path and the reference.
# TODO(synk): fuse into the top of the following block kernel.
# --------------------------------------------------------------------------
def bilinear_upsample_2x(x):  # x: NHWC
    def up(x, axis):
        n = x.shape[axis]
        idx = jnp.arange(n)
        xm = jnp.take(x, jnp.maximum(idx - 1, 0), axis=axis)
        xp = jnp.take(x, jnp.minimum(idx + 1, n - 1), axis=axis)
        even = 0.25 * xm + 0.75 * x          # dst=2i   -> src=i-0.25
        odd = 0.75 * x + 0.25 * xp           # dst=2i+1 -> src=i+0.25
        y = jnp.stack([even, odd], axis=axis + 1)
        shape = list(x.shape)
        shape[axis] = 2 * n
        return y.reshape(shape)

    return up(up(x, 1), 2)


# --------------------------------------------------------------------------
# Parameter initialization (deterministic, synthetic).
# --------------------------------------------------------------------------
def _nhwc_col_perm(C, H, W):
    """perm[j] = torch (NCHW-flat) column index for NHWC-flat index j."""
    j = jnp.arange(C * H * W)
    c = j % C
    w = (j // C) % W
    h = j // (C * W)
    perm = c * (H * W) + h * W + w
    # Sanity: gathering NCHW-flat columns with `perm` yields NHWC-flat order.
    t = jnp.arange(C * H * W)
    lhs = t[perm].reshape(H, W, C)
    rhs = jnp.transpose(t.reshape(C, H, W), (1, 2, 0))
    assert bool(jnp.all(lhs == rhs))
    return perm


def _quantize_int8_cols(w):
    amax = jnp.max(jnp.abs(w), axis=0)
    scale = jnp.maximum(amax, 1e-8) / 127.0
    q = jnp.clip(jnp.round(w / scale), -127.0, 127.0).astype(jnp.int8)
    return q, scale.astype(jnp.float32)


def _init_conv(key, ci, co):
    kw, kb = jax.random.split(key)
    w = 0.05 * jax.random.normal(kw, (3, 3, ci, co), jnp.float32)
    b = 0.01 * jax.random.normal(kb, (co,), jnp.float32)
    return w, b


def init_block_params(key, c_in):
    c_half = c_in // 2
    k1, k2, k3 = jax.random.split(key, 3)
    return dict(
        c1=_init_conv(k1, c_in, c_half),
        c2=_init_conv(k2, c_half, c_half),
        c3=_init_conv(k3, c_half, c_in),
        bn1=(jnp.ones((c_half,), jnp.float32), jnp.zeros((c_half,), jnp.float32)),
        bn2=(jnp.ones((c_half,), jnp.float32), jnp.zeros((c_half,), jnp.float32)),
        bn3=(jnp.ones((c_in,), jnp.float32), jnp.zeros((c_in,), jnp.float32)),
    )


def init_generator_params(key, g_input_dim):
    ks = jax.random.split(key, 10)
    F = 8 * 8 * 128  # 8192

    # fc1 / fc2: bf16 weights, fused into one block-diagonal (K12, 2F) matmul.
    w1 = (0.02 * jax.random.normal(ks[0], (g_input_dim, F), jnp.float32)
          ).astype(jnp.bfloat16)
    b1 = 0.01 * jax.random.normal(ks[1], (F,), jnp.float32)
    w2 = (0.02 * jax.random.normal(ks[2], (10, F), jnp.float32)
          ).astype(jnp.bfloat16)
    b2 = 0.01 * jax.random.normal(ks[3], (F,), jnp.float32)
    K12 = g_input_dim + 10
    w12 = jnp.zeros((K12, 2 * F), jnp.bfloat16)
    w12 = w12.at[:g_input_dim, :F].set(w1)
    w12 = w12.at[g_input_dim:, F:].set(w2)
    b12 = jnp.concatenate([b1, b2])

    # fc3: f32 init -> per-column int8 quantization -> NHWC column permutation
    # (so the Pallas output reshapes straight to (B, 8, 8, 128) NHWC).
    w3 = 0.02 * jax.random.normal(ks[4], (2 * F, F), jnp.float32)
    b3 = 0.01 * jax.random.normal(ks[5], (F,), jnp.float32)
    q3, s3 = _quantize_int8_cols(w3)
    perm = _nhwc_col_perm(128, 8, 8)

    return dict(
        fc12=dict(w=w12, b=b12, w1=w1, b1=b1, w2=w2, b2=b2),
        fc3=dict(q=q3[:, perm], s=s3[perm], b=b3[perm]),
        block1=init_block_params(ks[6], 128),
        block2=init_block_params(ks[7], 128),
        block3=init_block_params(ks[8], 128),
        final_conv=_init_conv(ks[9], 128, 3),
    )


# --------------------------------------------------------------------------
# Pallas forward pass
# --------------------------------------------------------------------------
def generator_forward(params, x, label, roll_sign):
    # fc1/fc2/concat fused; inputs pre-cast to bf16 once.
    xcat = jnp.concatenate([x, label], axis=1).astype(jnp.bfloat16)
    p12 = params["fc12"]
    fc12 = fc12_forward(xcat, p12["w"], p12["b"], slope=0.2)     # (B, 16384) bf16

    p3 = params["fc3"]
    fc3 = fc3_forward(fc12, p3["q"], p3["s"], p3["b"], slope=0.01)  # (B, 8192) f32

    # fc3's weight columns were permuted at init -> already NHWC flat order.
    h = fc3.reshape(-1, 8, 8, 128)

    h = block_forward(h, params["block1"], roll_sign)
    h = bilinear_upsample_2x(h)                     # 8x8  -> 16x16
    h = block_forward(h, params["block2"], roll_sign)
    h = bilinear_upsample_2x(h)                     # 16x16 -> 32x32
    h = block_forward(h, params["block3"], roll_sign)

    wf, bf = params["final_conv"]
    img_nhwc, logits_nhwc = final_conv_tanh(h, wf, bf, roll_sign)

    img = jnp.transpose(img_nhwc, (0, 3, 1, 2))       # back to NCHW
    logits = jnp.transpose(logits_nhwc, (0, 3, 1, 2))
    return img, logits


# --------------------------------------------------------------------------
# Pure-JAX / XLA reference of the same module (for in-script validation).
# --------------------------------------------------------------------------
def _ref_lin_lrelu(v, w, b, slope):
    y = jnp.dot(v.astype(jnp.bfloat16).astype(jnp.float32),
                w.astype(jnp.float32)) + b
    return jnp.where(y >= 0.0, y, slope * y)


def _ref_conv3x3(x, w, b):
    return jax.lax.conv_general_dilated(
        x, w, window_strides=(1, 1), padding="SAME",
        dimension_numbers=("NHWC", "HWIO", "NHWC")) + b


def _ref_bn_lrelu(y, g, be, eps=1e-5, slope=0.01):
    mean = jnp.mean(y, axis=(0, 1, 2), keepdims=True)
    yc = y - mean
    var = jnp.mean(yc * yc, axis=(0, 1, 2), keepdims=True)
    y = yc * jax.lax.rsqrt(var + eps) * g + be
    return jnp.where(y >= 0.0, y, slope * y)


def _ref_block(x, p):
    h = _ref_bn_lrelu(_ref_conv3x3(x, *p["c1"]), *p["bn1"])
    h = _ref_bn_lrelu(_ref_conv3x3(h, *p["c2"]), *p["bn2"])
    h = _ref_bn_lrelu(_ref_conv3x3(h, *p["c3"]), *p["bn3"])
    return x + h


def generator_forward_ref(params, x, label):
    p12 = params["fc12"]
    fc1 = _ref_lin_lrelu(x, p12["w1"], p12["b1"], 0.2)
    fc2 = _ref_lin_lrelu(label, p12["w2"], p12["b2"], 0.2)
    fc_concat = jnp.concatenate([fc1, fc2], axis=1)
    p3 = params["fc3"]
    w3 = p3["q"].astype(jnp.float32) * p3["s"]    # dequantized, NHWC-permuted
    fc3 = _ref_lin_lrelu(fc_concat, w3, p3["b"], 0.01)
    h = fc3.reshape(-1, 8, 8, 128)
    h = _ref_block(h, params["block1"])
    h = bilinear_upsample_2x(h)
    h = _ref_block(h, params["block2"])
    h = bilinear_upsample_2x(h)
    h = _ref_block(h, params["block3"])
    wf, bf = params["final_conv"]
    logits = jnp.transpose(_ref_conv3x3(h, wf, bf), (0, 3, 1, 2))
    return jnp.tanh(logits), logits


# --------------------------------------------------------------------------
if __name__ == "__main__":
    key = jax.random.PRNGKey(0)
    kp, kx, kl = jax.random.split(key, 3)

    g_input_dim = 64   # latent dim (module constructor arg)
    batch = 2

    params = init_generator_params(kp, g_input_dim)
    x = jax.random.normal(kx, (batch, g_input_dim), jnp.float32)
    label = jax.nn.one_hot(
        jax.random.randint(kl, (batch,), 0, 10), 10, dtype=jnp.float32)

    roll_sign = _probe_roll_sign()

    fwd = jax.jit(functools.partial(generator_forward, roll_sign=roll_sign))
    img, logits = fwd(params, x, label)
    jax.block_until_ready((img, logits))

    assert img.shape == (batch, 3, 32, 32), img.shape
    assert logits.shape == (batch, 3, 32, 32), logits.shape
    assert bool(jnp.all(jnp.isfinite(img))) and bool(jnp.all(jnp.isfinite(logits)))
    assert bool(jnp.all(jnp.abs(img) <= 1.0))

    # Validate the Pallas path against the pure-XLA reference of the module.
    img_ref, logits_ref = jax.jit(generator_forward_ref)(params, x, label)
    jax.block_until_ready((img_ref, logits_ref))
    assert bool(jnp.allclose(logits, logits_ref, atol=2e-2, rtol=2e-2)), \
        float(jnp.max(jnp.abs(logits - logits_ref)))
    assert bool(jnp.allclose(img, img_ref, atol=2e-2, rtol=2e-2)), \
        float(jnp.max(jnp.abs(img - img_ref)))

    print("KERNEL_OK")
</pallas_src>

<mosaic_0001>
module attributes {stable_mosaic.version = 11 : i64} {
  func.func @k(%arg0: memref<2x3x8x128xf32, #tpu.memory_space<vmem>>, %arg1: memref<2x3x8x128xf32, #tpu.memory_space<vmem>>) attributes {dimension_semantics = [], scalar_prefetch = 0 : i64, scratch_operands = 0 : i64, tpu.core_type = #tpu.core_type<tc>} {
    %c0 = arith.constant 0 : index
    %c0_0 = arith.constant 0 : index
    %c0_1 = arith.constant 0 : index
    %c0_2 = arith.constant 0 : index
    %0 = vector.load %arg0[%c0, %c0_0, %c0_1, %c0_2] : memref<2x3x8x128xf32, #tpu.memory_space<vmem>>, vector<2x3x8x128xf32>
    %c1_i32 = arith.constant 1 : i32
    %1 = tpu.dynamic_rotate %0 by %c1_i32 dim 2 : vector<2x3x8x128xf32>, i32 -> vector<2x3x8x128xf32>
    %c0_3 = arith.constant 0 : index
    %c0_4 = arith.constant 0 : index
    %c0_5 = arith.constant 0 : index
    %c0_6 = arith.constant 0 : index
    %2 = vector.load %arg1[%c0_3, %c0_4, %c0_5, %c0_6] : memref<2x3x8x128xf32, #tpu.memory_space<vmem>>, vector<2x3x8x128xf32>
    tpu.vector_store %arg1[%c0_3, %c0_4, %c0_5, %c0_6], %1 {strides = array<i32>} : memref<2x3x8x128xf32, #tpu.memory_space<vmem>>, vector<2x3x8x128xf32>,
    return
  }
}

</mosaic_0001>

<bundles_post_ra>
// kernel: tpu_custom_call.1
= control target key start
LH: loop header
LB: loop body
LE: loop exit
PB: predicated region body
PF: predicated region fallthrough
CT: control target
= control target key end

     0   :  { %6 = vsyncpa [#allocation3], 0  ;;  %s144_s0 = inlined_call_operand.hbm [shape: f32[2,3,8,128], index: 0, kind: input, shape index: {}]   ;;  %s145_s1 = inlined_call_operand.hbm [shape: f32[2,3,8,128], index: 1, kind: output, shape index: {}]  }
   0x1   :  { %7 = vsyncpa [#allocation4], 0  ;;  %s12_s8 = sshll.u32 %s144_s0, 4  ;;  %s118_s9 = smov [#allocation2]   ;;  %s13_s8 = int_to_ptr.hbm [resolvable:$true] %s12_s8 }
   0x2   :  { %s14_s10 = sshll.u32 %s118_s9, 4  ;;  %s119_s11 = smov 128   ;;  %s15_s10 = int_to_ptr.vmem [resolvable:$true] %s14_s10 }
   0x3   :  { %s120_s12 = smov 8  }
   0x4   :  { %20 = dma.hbm_to_vmem [thread:$0]  %s13_s8, 768, %s15_s10, [#allocation3], %s119_s11, %s119_s11, %s120_s12  }
   0x5   :  { %114 = dma.done.wait [#allocation3], 768  }
   0x6   :  { %115 = vsyncadd [#allocation3], 4294966528  ;;  %v25_v0 = vld [vmem:[#allocation2] sm:$0xff]  ;;  %v26_v1 = vld [vmem:[#allocation2 + $0x8] sm:$0xff]  ;;  %s121_s0 = smov [#allocation5]   ;;  %s49_s16 = sshll.u32 %s145_s1, 4  ;;  %s50_s16 = int_to_ptr.hbm [resolvable:$true] %s49_s16 }
   0x7   :  { %v27_v2 = vld [vmem:[#allocation2 + $0x10] sm:$0xff]  ;;  %v31_v3 = vrot.slane %v25_v0, 7  ;;  %v32_v4 = vrot.slane %v26_v1, 7  ;;  %v28_v6 = vld [vmem:[#allocation2 + $0x18] sm:$0xff]  ;;  %v29_v7 = vld [vmem:[#allocation2 + $0x20] sm:$0xff]  ;;  %s47_s13 = sshll.u32 %s121_s0, 4  ;;  %s48_s13 = int_to_ptr.vmem [resolvable:$true] %s47_s13 }
   0x8   :  { %v33_v5 = vrot.slane %v27_v2, 7  ;;  %v30_v8 = vld [vmem:[#allocation2 + $0x28] sm:$0xff]  ;;  %v34_v9 = vrot.slane %v28_v6, 7  ;;  %v35_v10 = vrot.slane %v29_v7, 7 }
   0x9   :  { %37 = vst [vmem:[#allocation5] sm:$0xff] %v31_v3  ;;  %v36_v11 = vrot.slane %v30_v8, 7 }
   0xa   :  { %38 = vst [vmem:[#allocation5 + $0x8] sm:$0xff] %v32_v4 }
   0xb   :  { %39 = vst [vmem:[#allocation5 + $0x10] sm:$0xff] %v33_v5 }
   0xc   :  { %40 = vst [vmem:[#allocation5 + $0x18] sm:$0xff] %v34_v9 }
   0xd   :  { %41 = vst [vmem:[#allocation5 + $0x20] sm:$0xff] %v35_v10 }
   0xe   :  { %42 = vst [vmem:[#allocation5 + $0x28] sm:$0xff] %v36_v11 }
   0xf   :  { %55 = dma.vmem_to_hbm [thread:$0]  %s48_s13, 768, %s50_s16, [#allocation4], %s119_s11, %s119_s11, %s120_s12  }
  0x10   :  { %116 = dma.done.wait [#allocation4], 768  }
  0x11   :  { %117 = vsyncadd [#allocation4], 4294966528 }
  0x12   :  { %60 = vsyncpa [#allocation3], 1 }
  0x13   :  { %61 = vsyncpa [#allocation4], 1 }

</bundles_post_ra>
